<compile_context>
chip_gen: v5e
topology: v5e:2x2
jax: 0.10.0
libtpu: 0.0.40
codegen_flags: <defaults>
</compile_context>

<pallas_src>
import jax
import jax.numpy as jnp
from jax.experimental import pallas as pl
from jax.experimental.pallas import tpu as pltpu


def _round_up(x, m):
    return ((x + m - 1) // m) * m


def _vmem_capacity_bytes():
    """Physical VMEM of the local TPU generation (conservative fallback)."""
    try:
        cap = getattr(pltpu.get_tpu_info(), "vmem_capacity_bytes", None)
        if cap:
            return int(cap)
    except Exception:
        pass
    return 64 << 20  # v7x-sized fallback: safe on every generation


def beta_vae_kernel(x_ref, w_ref, b_ref, eps_ref, z_ref, mu_ref, lv_ref):
    """One batch tile: fused (TILE_B, 2*Ep) GEMM + reparameterization trick."""
    e = mu_ref.shape[-1]            # logical embedding size E
    ep = w_ref.shape[-1] // 2       # lane-aligned per-half output width
    x = x_ref[...]                                            # (TILE_B, E)
    # Single MXU pass over x against the fused [W_mu | W_std]; f32 accumulation.
    y = jnp.dot(x, w_ref[...], preferred_element_type=jnp.float32)
    y = y + b_ref[...]                                        # one bias broadcast-add
    mu = y[:, :e]                   # write the two halves straight out --
    lv = y[:, ep:ep + e]            # no extra (TILE_B, 2*Ep) copies kept live
    z = mu + eps_ref[...] * jnp.exp(lv * 0.5)                 # exp goes to the EUP
    mu_ref[...] = mu.astype(mu_ref.dtype)
    lv_ref[...] = lv.astype(lv_ref.dtype)
    z_ref[...] = z.astype(z_ref.dtype)


def beta_vae_forward(latent_state, w_mu, b_mu, w_std, b_std, eps, *, tile_b=2048):
    """Beta_Vae forward.

    latent_state : (B, E) f32
    w_mu, w_std  : (E, E) in PyTorch layout (out_features, in_features)
    b_mu, b_std  : (E,)
    eps          : (B, E) standard-normal noise (host-supplied for determinism)
    Returns (z, mu, log_var), each (B, E) f32 with no post-kernel slicing.
    """
    f32 = jnp.float32
    B, E = latent_state.shape
    Ep = _round_up(E, 128)          # per-half width of the fused GEMM result

    x = latent_state.astype(f32)
    eps = eps.astype(f32)

    # ---- tiny, one-time weight/bias prep (the only padded/concatenated data) ----
    def pad_cols(a):                # no-op whenever E % 128 == 0
        return a if Ep == E else jnp.pad(a, ((0, 0), (0, Ep - E)))

    w_cat = jnp.concatenate(
        [pad_cols(w_mu.T.astype(f32)), pad_cols(w_std.T.astype(f32))], axis=1
    )                                                         # (E, 2*Ep)
    b_cat = jnp.concatenate(
        [pad_cols(b_mu.reshape(1, E).astype(f32)),
         pad_cols(b_std.reshape(1, E).astype(f32))], axis=1
    )                                                         # (1, 2*Ep)

    # ---- generation-aware VMEM budget & batch-tile selection ----
    budget = _vmem_capacity_bytes() * 3 // 4     # ~48 MiB on v7x, ~96 MiB on v5e/v6e
    w_bytes = (E * 2 * Ep + 2 * Ep) * 4          # single-buffered (memory_space=VMEM)

    def footprint(tb):
        streams = 5 * 2 * tb * Ep * 4            # x, eps, z, mu, lv: double-buffered pipeline
        interm = (2 * Ep + 3 * Ep) * tb * 4      # fused y + z/mu/lv epilogue temporaries
        return w_bytes + streams + interm

    TILE_B = _round_up(max(8, min(tile_b, _round_up(B, 8))), 8)
    if B >= 16:
        # Guarantee >= 2 grid steps so the "parallel" batch axis can shard
        # across both v7x TensorCores; ~free on single-TC v5e/v6e.
        TILE_B = min(TILE_B, _round_up(pl.cdiv(B, 2), 8))
    while TILE_B > 8 and footprint(TILE_B) > budget:
        TILE_B = _round_up(TILE_B // 2, 8)
    if TILE_B >= B:
        TILE_B = B                  # single full-batch block (covers tiny / odd B)
    grid = (pl.cdiv(B, TILE_B),)    # ragged last block handled (masked) by Pallas

    vmem_limit = int(min(budget, max(footprint(TILE_B) + (4 << 20), 32 << 20)))

    row_spec = pl.BlockSpec((TILE_B, E), lambda i: (i, 0))
    # Whole-array VMEM residency for the constant operands: one copy, no second
    # pipeline buffer, never re-DMA'd across grid steps.
    w_spec = pl.BlockSpec(memory_space=pltpu.MemorySpace.VMEM)
    b_spec = pl.BlockSpec(memory_space=pltpu.MemorySpace.VMEM)
    out_sds = jax.ShapeDtypeStruct((B, E), f32)

    cost = pl.CostEstimate(
        flops=int(4 * B * E * Ep),                            # two (B,E)x(E,Ep) GEMMs
        transcendentals=int(B * E),                           # one exp per element
        bytes_accessed=int((5 * B * E + E * 2 * Ep + 2 * Ep) * 4),
    )

    z, mu, log_var = pl.pallas_call(
        beta_vae_kernel,
        out_shape=(out_sds, out_sds, out_sds),
        grid=grid,
        in_specs=[row_spec, w_spec, b_spec, row_spec],
        out_specs=(row_spec, row_spec, row_spec),
        compiler_params=pltpu.CompilerParams(
            dimension_semantics=("parallel",),
            vmem_limit_bytes=vmem_limit,
        ),
        cost_estimate=cost,
    )(x, w_cat, b_cat, eps)

    return z, mu, log_var


def init_params(key, embedding_size):
    """PyTorch-style Linear init: uniform(-1/sqrt(in), 1/sqrt(in)), (out, in) layout."""
    k1, k2, k3, k4 = jax.random.split(key, 4)
    bound = 1.0 / jnp.sqrt(jnp.float32(embedding_size))
    w_mu = jax.random.uniform(k1, (embedding_size, embedding_size),
                              jnp.float32, -bound, bound)
    b_mu = jax.random.uniform(k2, (embedding_size,), jnp.float32, -bound, bound)
    w_std = jax.random.uniform(k3, (embedding_size, embedding_size),
                               jnp.float32, -bound, bound)
    b_std = jax.random.uniform(k4, (embedding_size,), jnp.float32, -bound, bound)
    return w_mu, b_mu, w_std, b_std


if __name__ == "__main__":
    embedding_size = 5
    batch = 8

    key = jax.random.PRNGKey(0)
    k_param, k_x, k_eps = jax.random.split(key, 3)

    w_mu, b_mu, w_std, b_std = init_params(k_param, embedding_size)
    latent_state = jax.random.normal(k_x, (batch, embedding_size), jnp.float32)
    eps = jax.random.normal(k_eps, (batch, embedding_size), jnp.float32)

    z, mu, log_var = beta_vae_forward(latent_state, w_mu, b_mu, w_std, b_std, eps)
    jax.block_until_ready((z, mu, log_var))

    # Pure-JAX reference check (PyTorch Linear semantics: x @ W.T + b).
    mu_ref = latent_state @ w_mu.T + b_mu
    lv_ref = latent_state @ w_std.T + b_std
    z_ref = mu_ref + eps * jnp.exp(0.5 * lv_ref)
    assert jnp.allclose(mu, mu_ref, atol=1e-5), "mu mismatch"
    assert jnp.allclose(log_var, lv_ref, atol=1e-5), "log_var mismatch"
    assert jnp.allclose(z, z_ref, atol=1e-5), "z mismatch"

    print("KERNEL_OK")
</pallas_src>

<mosaic_0001>
module attributes {stable_mosaic.version = 11 : i64} {
  func.func @beta_vae_kernel(%arg0: i32, %arg1: memref<8x5xf32, #tpu.memory_space<vmem>>, %arg2: memref<5x256xf32, #tpu.memory_space<vmem>>, %arg3: memref<1x256xf32, #tpu.memory_space<vmem>>, %arg4: memref<8x5xf32, #tpu.memory_space<vmem>>, %arg5: memref<8x5xf32, #tpu.memory_space<vmem>>, %arg6: memref<8x5xf32, #tpu.memory_space<vmem>>, %arg7: memref<8x5xf32, #tpu.memory_space<vmem>>) attributes {dimension_semantics = [#tpu.dimension_semantics<parallel>], iteration_bounds = array<i64: 1>, scalar_prefetch = 0 : i64, scratch_operands = 0 : i64, tpu.core_type = #tpu.core_type<tc>, window_params = [{transform_indices = @transform_0, window_bounds = array<i64: 8, 5>}, {pipeline_mode = #tpu.pipeline_mode<synchronous>, transform_indices = @transform_1, window_bounds = array<i64: 5, 256>}, {pipeline_mode = #tpu.pipeline_mode<synchronous>, transform_indices = @transform_2, window_bounds = array<i64: 1, 256>}, {transform_indices = @transform_3, window_bounds = array<i64: 8, 5>}, {transform_indices = @transform_4, window_bounds = array<i64: 8, 5>}, {transform_indices = @transform_5, window_bounds = array<i64: 8, 5>}, {transform_indices = @transform_6, window_bounds = array<i64: 8, 5>}]} {
    %c0 = arith.constant 0 : index
    %c0_0 = arith.constant 0 : index
    %0 = vector.load %arg1[%c0, %c0_0] : memref<8x5xf32, #tpu.memory_space<vmem>>, vector<8x5xf32>
    %c0_1 = arith.constant 0 : index
    %c0_2 = arith.constant 0 : index
    %1 = vector.load %arg2[%c0_1, %c0_2] : memref<5x256xf32, #tpu.memory_space<vmem>>, vector<5x256xf32>
    %cst = arith.constant dense<0.000000e+00> : vector<8x256xf32>
    %2 = tpu.matmul %0, %1, %cst {dimension_numbers = #tpu.dot_dimension_numbers<[1], [0], [0], [1], [0, 0, 1, 1], [], []>} : vector<8x5xf32>, vector<5x256xf32>, vector<8x256xf32> -> vector<8x256xf32>
    %c0_3 = arith.constant 0 : index
    %c0_4 = arith.constant 0 : index
    %3 = vector.load %arg3[%c0_3, %c0_4] : memref<1x256xf32, #tpu.memory_space<vmem>>, vector<1x256xf32>
    %4 = vector.broadcast %3 : vector<1x256xf32> to vector<8x256xf32>
    %5 = arith.addf %2, %4 : vector<8x256xf32>
    %6 = vector.extract_strided_slice %5 {offsets = [0, 0], sizes = [8, 5], strides = [1, 1]} : vector<8x256xf32> to vector<8x5xf32>
    %7 = vector.extract_strided_slice %5 {offsets = [0, 128], sizes = [8, 5], strides = [1, 1]} : vector<8x256xf32> to vector<8x5xf32>
    %c0_5 = arith.constant 0 : index
    %c0_6 = arith.constant 0 : index
    %8 = vector.load %arg4[%c0_5, %c0_6] : memref<8x5xf32, #tpu.memory_space<vmem>>, vector<8x5xf32>
    %cst_7 = arith.constant 5.000000e-01 : f32
    %9 = vector.broadcast %cst_7 : f32 to vector<8x5xf32>
    %10 = arith.mulf %7, %9 : vector<8x5xf32>
    %11 = math.exp %10 : vector<8x5xf32>
    %12 = arith.mulf %8, %11 : vector<8x5xf32>
    %13 = arith.addf %6, %12 : vector<8x5xf32>
    %c0_8 = arith.constant 0 : index
    %c0_9 = arith.constant 0 : index
    %14 = vector.load %arg6[%c0_8, %c0_9] : memref<8x5xf32, #tpu.memory_space<vmem>>, vector<8x5xf32>
    tpu.vector_store %arg6[%c0_8, %c0_9], %6 {strides = array<i32>} : memref<8x5xf32, #tpu.memory_space<vmem>>, vector<8x5xf32>,
    %c0_10 = arith.constant 0 : index
    %c0_11 = arith.constant 0 : index
    %15 = vector.load %arg7[%c0_10, %c0_11] : memref<8x5xf32, #tpu.memory_space<vmem>>, vector<8x5xf32>
    tpu.vector_store %arg7[%c0_10, %c0_11], %7 {strides = array<i32>} : memref<8x5xf32, #tpu.memory_space<vmem>>, vector<8x5xf32>,
    %c0_12 = arith.constant 0 : index
    %c0_13 = arith.constant 0 : index
    %16 = vector.load %arg5[%c0_12, %c0_13] : memref<8x5xf32, #tpu.memory_space<vmem>>, vector<8x5xf32>
    tpu.vector_store %arg5[%c0_12, %c0_13], %13 {strides = array<i32>} : memref<8x5xf32, #tpu.memory_space<vmem>>, vector<8x5xf32>,
    return
  }
  func.func @transform_0(%arg0: i32) -> (i32, i32) {
    %c0_i32 = arith.constant 0 : i32
    %c0_i32_0 = arith.constant 0 : i32
    return %arg0, %c0_i32 : i32, i32
  }
  func.func @transform_1(%arg0: i32) -> (i32, i32) {
    %c0_i32 = arith.constant 0 : i32
    %c0_i32_0 = arith.constant 0 : i32
    %c0_i32_1 = arith.constant 0 : i32
    return %c0_i32, %c0_i32_0 : i32, i32
  }
  func.func @transform_2(%arg0: i32) -> (i32, i32) {
    %c0_i32 = arith.constant 0 : i32
    %c0_i32_0 = arith.constant 0 : i32
    %c0_i32_1 = arith.constant 0 : i32
    return %c0_i32, %c0_i32_0 : i32, i32
  }
  func.func @transform_3(%arg0: i32) -> (i32, i32) {
    %c0_i32 = arith.constant 0 : i32
    %c0_i32_0 = arith.constant 0 : i32
    return %arg0, %c0_i32 : i32, i32
  }
  func.func @transform_4(%arg0: i32) -> (i32, i32) {
    %c0_i32 = arith.constant 0 : i32
    %c0_i32_0 = arith.constant 0 : i32
    return %arg0, %c0_i32 : i32, i32
  }
  func.func @transform_5(%arg0: i32) -> (i32, i32) {
    %c0_i32 = arith.constant 0 : i32
    %c0_i32_0 = arith.constant 0 : i32
    return %arg0, %c0_i32 : i32, i32
  }
  func.func @transform_6(%arg0: i32) -> (i32, i32) {
    %c0_i32 = arith.constant 0 : i32
    %c0_i32_0 = arith.constant 0 : i32
    return %arg0, %c0_i32 : i32, i32
  }
}

</mosaic_0001>

<bundles_post_ra>
// kernel: tpu_custom_call.1
= control target key start
LH: loop header
LB: loop body
LE: loop exit
PB: predicated region body
PF: predicated region fallthrough
CT: control target
= control target key end

     0   :  { %12 = vsyncpa [#allocation3], 0  ;;  %s455_s0 = inlined_call_operand.hbm [shape: f32[8,5], index: 0, kind: input, shape index: {}]   ;;  %s456_s1 = inlined_call_operand.hbm [shape: f32[5,256], index: 1, kind: input, shape index: {}]   ;;  %s457_s2 = inlined_call_operand.hbm [shape: f32[1,256], index: 2, kind: input, shape index: {}]   ;;  %s458_s3 = inlined_call_operand.hbm [shape: f32[8,5], index: 3, kind: input, shape index: {}]   ;;  %s459_s4 = inlined_call_operand.hbm [shape: f32[8,5], index: 4, kind: output, shape index: {0}]   ;;  %s460_s5 = inlined_call_operand.hbm [shape: f32[8,5], index: 5, kind: output, shape index: {1}]   ;;  %s461_s6 = inlined_call_operand.hbm [shape: f32[8,5], index: 6, kind: output, shape index: {2}]  }
   0x1   :  { %13 = vsyncpa [#allocation6], 0 }
   0x2   :  { %14 = vsyncpa [#allocation9], 0 }
   0x3   :  { %15 = vsyncpa [#allocation4], 0  ;;  %s33_s23 = sshll.u32 %s456_s1, 4  ;;  %s34_s23 = int_to_ptr.hbm [resolvable:$true] %s33_s23 }
   0x4   :  { %16 = vsyncpa [#allocation12], 0  ;;  %s387_s24 = smov [#allocation5]   ;;  %s22_s28 = sshll.u32 %s455_s0, 4  ;;  %s23_s28 = int_to_ptr.hbm [resolvable:$true] %s22_s28 }
   0x5   :  { %s35_s25 = sshll.u32 %s387_s24, 4  ;;  %s388_s29 = smov [#allocation2]   ;;  %s36_s25 = int_to_ptr.vmem [resolvable:$true] %s35_s25 }
   0x6   :  { %38 = dma.hbm_to_vmem [thread:$0]  %s34_s23, 256, %s36_s25, [#allocation6]  }
   0x7   :  { %s24_s30 = sshll.u32 %s388_s29, 4  ;;  %s44_s9 = sshll.u32 %s457_s2, 4  ;;  %s25_s30 = int_to_ptr.vmem [resolvable:$true] %s24_s30  ;;  %s45_s9 = int_to_ptr.hbm [resolvable:$true] %s44_s9 }
   0x8   :  { %27 = dma.hbm_to_vmem [thread:$0]  %s23_s28, 128, %s25_s30, [#allocation3]  }
   0x9   :  { %s55_s11 = sshll.u32 %s458_s3, 4  ;;  %s389_s12 = smov [#allocation7]   ;;  %s56_s11 = int_to_ptr.hbm [resolvable:$true] %s55_s11 }
   0xa   :  { %s46_s13 = sshll.u32 %s389_s12, 4  ;;  %s390_s0 = smov [#allocation8]   ;;  %s47_s13 = int_to_ptr.vmem [resolvable:$true] %s46_s13 }
   0xb   :  { %49 = dma.hbm_to_vmem [thread:$0]  %s45_s9, 32, %s47_s13, [#allocation6]  }
   0xc   :  { %s57_s14 = sshll.u32 %s390_s0, 4  ;;  %s58_s14 = int_to_ptr.vmem [resolvable:$true] %s57_s14 }
   0xd   :  { %60 = dma.hbm_to_vmem [thread:$0]  %s56_s11, 128, %s58_s14, [#allocation9]  }
   0xe   :  { %377 = dma.done.wait [#allocation3], 128  }
   0xf   :  { %378 = vsyncadd [#allocation3], 4294967168 }
  0x10   :  { %379 = dma.done.wait [#allocation6], 288  }
  0x11   :  { %380 = vsyncadd [#allocation6], 4294967008 }
  0x12   :  { %381 = dma.done.wait [#allocation9], 128  }
  0x13   :  { %382 = vsyncadd [#allocation9], 4294967168  ;;  %vm90_vm0 = vcmask 1044480   ;;  %vm86_vm1 = vcmask 39936   ;;  %v79_v0 = vld [vmem:[#allocation5 + $0x8] sm:$0x1f] }
  0x14   :  { %v77_v1 = vld [vmem:[#allocation2] sm:$0xff]  ;;  %v78_v2 = vld [vmem:[#allocation5] sm:$0x1f]  ;;  %198 = vmatpush.msk.msra.mxu1 %vm90_vm0, %v79_v0  ;;  %v80_v3 = vld [vmem:[#allocation7] sm:$0x3]  ;;  %s391_s2 = smov [#allocation11]  }
  0x15   :  { %196 = vmatpush.msk.msra.mxu0 %vm90_vm0, %v78_v2  ;;  %199 = vmatmul.msk.f32.vlgmr.msra.gmra.mxu1 %vm86_vm1, %v77_v1  ;;  %v83_v4 = vperm.slane %v80_v3, 1  ;;  %v82_v5 = vperm.slane %v80_v3, 0  ;;  %s162_s3 = sshll.u32 %s391_s2, 4  ;;  %s164_s17 = sshll.u32 %s460_s5, 4  ;;  %v137_v12 = vld [vmem:[#allocation8] sm:$0xff]  ;;  %s163_s3 = int_to_ptr.vmem [resolvable:$true] %s162_s3  ;;  %s165_s17 = int_to_ptr.hbm [resolvable:$true] %s164_s17 }
  0x16   :  { %197 = vmatmul.msk.f32.vlgmr.msra.gmra.mxu0 %vm86_vm1, %v77_v1  ;;  %s392_s18 = smov [#allocation13]   ;;  %s175_s22 = sshll.u32 %s461_s6, 4  ;;  %s176_s22 = int_to_ptr.hbm [resolvable:$true] %s175_s22 }
  0x17   :  { %s173_s19 = sshll.u32 %s392_s18, 4  ;;  %s393_s5 = smov [#allocation10]   ;;  %s174_s19 = int_to_ptr.vmem [resolvable:$true] %s173_s19 }
  0x18   :  { %s151_s23 = sshll.u32 %s393_s5, 4  ;;  %s153_s25 = sshll.u32 %s459_s4, 4  ;;  %s152_s23 = int_to_ptr.vmem [resolvable:$true] %s151_s23  ;;  %s154_s25 = int_to_ptr.hbm [resolvable:$true] %s153_s25 }
  0x92   :  { %v134_v6 = vpop.f32.mrf.mxu1 }
  0x93   :  { %v114_v7 = vpop.f32.mrf.mxu0  ;;  %v135_v8 = vadd.f32 %v134_v6, %v83_v4 }
  0x94   :  { %v115_v9 = vadd.f32 %v114_v7, %v82_v5 }
  0x95   :  { %v138_v10 = vmul.f32 0.5, %v135_v8  ;;  %144 = vst.msk [vmem:[#allocation13] sm:$0xff] %vm86_vm1, %v135_v8 }
  0x96   :  { %143 = vst.msk [vmem:[#allocation11] sm:$0xff] %vm86_vm1, %v115_v9 }
  0x97   :  { %v139_v11 = vmul.f32 1.442695, %v138_v10  ;;  %167 = dma.vmem_to_hbm [thread:$0]  %s163_s3, 128, %s165_s17, [#allocation12]  }
  0x98   :  { %178 = dma.vmem_to_hbm [thread:$0]  %s174_s19, 128, %s176_s22, [#allocation12]  }
  0x99   :  { %207 = vpow2.f32 %v139_v11 }
  0x9f   :  { %v208_v13 = vpop.eup %207 }
  0xa0   :  { %v141_v14 = vmul.f32 %v208_v13, %v137_v12 }
  0xa2   :  { %v142_v15 = vadd.f32 %v141_v14, %v115_v9 }
  0xa4   :  { %145 = vst.msk [vmem:[#allocation10] sm:$0xff] %vm86_vm1, %v142_v15 }
  0xa5   :  { %156 = dma.vmem_to_hbm [thread:$0]  %s152_s23, 128, %s154_s25, [#allocation4]  }
  0xa6   :  { %383 = dma.done.wait [#allocation4], 128  }
  0xa7   :  { %384 = vsyncadd [#allocation4], 4294967168 }
  0xa8   :  { %385 = dma.done.wait [#allocation12], 256  }
  0xa9   :  { %386 = vsyncadd [#allocation12], 4294967040 }
  0xaa   :  { %191 = vsyncpa [#allocation3], 1 }
  0xab   :  { %192 = vsyncpa [#allocation6], 1 }
  0xac   :  { %193 = vsyncpa [#allocation9], 1 }
  0xad   :  { %194 = vsyncpa [#allocation4], 1 }
  0xae   :  { %195 = vsyncpa [#allocation12], 1 }

</bundles_post_ra>
